<compile_context>
chip_gen: v5e
topology: v5e:2x2
jax: 0.10.0
libtpu: 0.0.40
codegen_flags: <defaults>
</compile_context>

<pallas_src>
import jax
import jax.numpy as jnp
from jax.experimental import pallas as pl
from jax.experimental.pallas import tpu as pltpu


def _round_up(x, m):
    return (x + m - 1) // m * m


def _fused_net_kernel(x_ref, w_enc_ref, w_head_ref, b_fold_ref, o_ref, feat_acc):
    """Fused: scores = (x @ w_enc_t) @ w_head_t + b_fold.

    Grid axis 0 tiles the encoder contraction dimension (d_in).
    feat_acc is a VMEM f32 accumulator holding the (padded, bias-less) features.
    """
    k = pl.program_id(0)

    @pl.when(k == 0)
    def _init():
        feat_acc[...] = jnp.zeros_like(feat_acc)

    # Encoder partial matmul on the stored (pre-transposed) layout: no .T.
    feat_acc[...] += jnp.dot(x_ref[...], w_enc_ref[...],
                             preferred_element_type=jnp.float32)

    @pl.when(k == pl.num_programs(0) - 1)
    def _finish():
        # .detach() is a no-op for forward values; feat stays VMEM-resident.
        scores = jnp.dot(feat_acc[...], w_head_ref[...],
                         preferred_element_type=jnp.float32) + b_fold_ref[...]
        o_ref[...] = scores.astype(o_ref.dtype)


def net_forward(x, params, *, tk_max=1024):
    """Forward pass of `net`.

    x: [B, C, H, W] float32 (NCHW, PyTorch convention)
    params: dict with encoder + head weights (PyTorch nn.Linear layout).
    returns: scores [B, n_way] float32
    """
    B = x.shape[0]
    x_flat = x.reshape(B, -1)                       # glue: flatten NCHW
    d_in = x_flat.shape[1]
    feat_dim = params["w_enc"].shape[0]
    n_way = params["w_head"].shape[0]

    # Lane/sublane-dense padded shapes.
    B_p = _round_up(B, 8)
    F_p = _round_up(feat_dim, 128)
    N_p = _round_up(n_way, 128)
    d_in_p = _round_up(d_in, 128)
    tk = d_in_p if d_in_p <= tk_max else tk_max      # contraction tile
    d_in_p = _round_up(d_in_p, tk)

    # Pre-transpose weights once ([out,in] -> [in,out]) and zero-pad everything.
    xp = jnp.zeros((B_p, d_in_p), jnp.float32).at[:B, :d_in].set(x_flat)
    w_enc_t = jnp.zeros((d_in_p, F_p), jnp.float32).at[:d_in, :feat_dim].set(
        params["w_enc"].T)
    w_head_t = jnp.zeros((F_p, N_p), jnp.float32).at[:feat_dim, :n_way].set(
        params["w_head"].T)
    # Fold the encoder bias through the head:  b_fold = b_enc @ W_head^T + b_head.
    b_fold_raw = params["b_enc"] @ params["w_head"].T + params["b_head"]   # [n_way]
    b_fold = jnp.zeros((1, N_p), jnp.float32).at[0, :n_way].set(b_fold_raw)

    grid = (d_in_p // tk,)
    scores_p = pl.pallas_call(
        _fused_net_kernel,
        out_shape=jax.ShapeDtypeStruct((B_p, N_p), jnp.float32),
        grid=grid,
        in_specs=[
            pl.BlockSpec((B_p, tk), lambda k: (0, k)),     # x: slide along K
            pl.BlockSpec((tk, F_p), lambda k: (k, 0)),     # w_enc_t: slide along K
            pl.BlockSpec((F_p, N_p), lambda k: (0, 0)),    # w_head_t: resident
            pl.BlockSpec((1, N_p), lambda k: (0, 0)),      # b_fold: resident
        ],
        out_specs=pl.BlockSpec((B_p, N_p), lambda k: (0, 0)),
        scratch_shapes=[pltpu.VMEM((B_p, F_p), jnp.float32)],
        compiler_params=pltpu.CompilerParams(
            dimension_semantics=("arbitrary",),            # K is a reduction axis
        ),
    )(xp, w_enc_t, w_head_t, b_fold)

    # TODO(synk): the .detach() only affects backward; a fused-kernel gradient
    # would need a custom_vjp to stop gradients at feat (forward is identical).
    return scores_p[:B, :n_way]


def init_params(key, d_in, feat_dim, n_way):
    """Deterministic init mimicking PyTorch's default Linear init (uniform)."""
    k1, k2, k3, k4 = jax.random.split(key, 4)
    lim_e = 1.0 / jnp.sqrt(d_in)
    lim_h = 1.0 / jnp.sqrt(feat_dim)
    return {
        "w_enc": jax.random.uniform(k1, (feat_dim, d_in), jnp.float32, -lim_e, lim_e),
        "b_enc": jax.random.uniform(k2, (feat_dim,), jnp.float32, -lim_e, lim_e),
        "w_head": jax.random.uniform(k3, (n_way, feat_dim), jnp.float32, -lim_h, lim_h),
        "b_head": jax.random.uniform(k4, (n_way,), jnp.float32, -lim_h, lim_h),
    }


if __name__ == "__main__":
    # Small shapes consistent with the module: batch=2, channels=4, spatial=16,
    # encoder feat_dim=32, n_way=5.
    B, C, H, W = 2, 4, 16, 16
    feat_dim, n_way = 32, 5
    d_in = C * H * W

    key = jax.random.PRNGKey(0)
    kx, kp = jax.random.split(key)
    x = jax.random.normal(kx, (B, C, H, W), dtype=jnp.float32)
    params = init_params(kp, d_in, feat_dim, n_way)

    scores = net_forward(x, params)
    scores = jax.block_until_ready(scores)

    # Reference check in plain JAX (same math, un-folded biases).
    feat_ref = x.reshape(B, -1) @ params["w_enc"].T + params["b_enc"]
    scores_ref = feat_ref @ params["w_head"].T + params["b_head"]
    assert scores.shape == (B, n_way)
    assert jnp.allclose(scores, scores_ref, atol=1e-4, rtol=1e-4)

    print("KERNEL_OK")
</pallas_src>

<mosaic_0001>
module attributes {stable_mosaic.version = 11 : i64} {
  func.func @_fused_net_kernel(%arg0: i32, %arg1: memref<8x1024xf32, #tpu.memory_space<vmem>>, %arg2: memref<1024x128xf32, #tpu.memory_space<vmem>>, %arg3: memref<128x128xf32, #tpu.memory_space<vmem>>, %arg4: memref<1x128xf32, #tpu.memory_space<vmem>>, %arg5: memref<8x128xf32, #tpu.memory_space<vmem>>, %arg6: memref<8x128xf32, #tpu.memory_space<vmem>>) attributes {dimension_semantics = [#tpu.dimension_semantics<arbitrary>], iteration_bounds = array<i64: 1>, scalar_prefetch = 0 : i64, scratch_operands = 1 : i64, tpu.core_type = #tpu.core_type<tc>, window_params = [{transform_indices = @transform_0, window_bounds = array<i64: 8, 1024>}, {transform_indices = @transform_1, window_bounds = array<i64: 1024, 128>}, {pipeline_mode = #tpu.pipeline_mode<synchronous>, transform_indices = @transform_2, window_bounds = array<i64: 128, 128>}, {pipeline_mode = #tpu.pipeline_mode<synchronous>, transform_indices = @transform_3, window_bounds = array<i64: 1, 128>}, {pipeline_mode = #tpu.pipeline_mode<synchronous>, transform_indices = @transform_4, window_bounds = array<i64: 8, 128>}]} {
    %c0_i32 = arith.constant 0 : i32
    %0 = arith.cmpi eq, %arg0, %c0_i32 : i32
    %1 = arith.extui %0 : i1 to i32
    %c0_i32_0 = arith.constant 0 : i32
    %2 = arith.cmpi ne, %1, %c0_i32_0 : i32
    scf.if %2 {
      %cst_10 = arith.constant 0.000000e+00 : f32
      %12 = vector.broadcast %cst_10 : f32 to vector<8x128xf32>
      %c0_11 = arith.constant 0 : index
      %c0_12 = arith.constant 0 : index
      %13 = vector.load %arg6[%c0_11, %c0_12] : memref<8x128xf32, #tpu.memory_space<vmem>>, vector<8x128xf32>
      tpu.vector_store %arg6[%c0_11, %c0_12], %12 {strides = array<i32>} : memref<8x128xf32, #tpu.memory_space<vmem>>, vector<8x128xf32>,
    } else {
    }
    %c0 = arith.constant 0 : index
    %c0_1 = arith.constant 0 : index
    %3 = vector.load %arg6[%c0, %c0_1] : memref<8x128xf32, #tpu.memory_space<vmem>>, vector<8x128xf32>
    %c0_2 = arith.constant 0 : index
    %c0_3 = arith.constant 0 : index
    %4 = vector.load %arg1[%c0_2, %c0_3] : memref<8x1024xf32, #tpu.memory_space<vmem>>, vector<8x1024xf32>
    %c0_4 = arith.constant 0 : index
    %c0_5 = arith.constant 0 : index
    %5 = vector.load %arg2[%c0_4, %c0_5] : memref<1024x128xf32, #tpu.memory_space<vmem>>, vector<1024x128xf32>
    %cst = arith.constant dense<0.000000e+00> : vector<8x128xf32>
    %6 = tpu.matmul %4, %5, %cst {dimension_numbers = #tpu.dot_dimension_numbers<[1], [0], [0], [1], [0, 0, 1, 1], [], []>} : vector<8x1024xf32>, vector<1024x128xf32>, vector<8x128xf32> -> vector<8x128xf32>
    %7 = arith.addf %3, %6 : vector<8x128xf32>
    %c0_6 = arith.constant 0 : index
    %c0_7 = arith.constant 0 : index
    %8 = vector.load %arg6[%c0_6, %c0_7] : memref<8x128xf32, #tpu.memory_space<vmem>>, vector<8x128xf32>
    tpu.vector_store %arg6[%c0_6, %c0_7], %7 {strides = array<i32>} : memref<8x128xf32, #tpu.memory_space<vmem>>, vector<8x128xf32>,
    %c0_i32_8 = arith.constant 0 : i32
    %9 = arith.cmpi eq, %arg0, %c0_i32_8 : i32
    %10 = arith.extui %9 : i1 to i32
    %c0_i32_9 = arith.constant 0 : i32
    %11 = arith.cmpi ne, %10, %c0_i32_9 : i32
    scf.if %11 {
      %c0_10 = arith.constant 0 : index
      %c0_11 = arith.constant 0 : index
      %12 = vector.load %arg6[%c0_10, %c0_11] : memref<8x128xf32, #tpu.memory_space<vmem>>, vector<8x128xf32>
      %c0_12 = arith.constant 0 : index
      %c0_13 = arith.constant 0 : index
      %13 = vector.load %arg3[%c0_12, %c0_13] : memref<128x128xf32, #tpu.memory_space<vmem>>, vector<128x128xf32>
      %cst_14 = arith.constant dense<0.000000e+00> : vector<8x128xf32>
      %14 = tpu.matmul %12, %13, %cst_14 {dimension_numbers = #tpu.dot_dimension_numbers<[1], [0], [0], [1], [0, 0, 1, 1], [], []>} : vector<8x128xf32>, vector<128x128xf32>, vector<8x128xf32> -> vector<8x128xf32>
      %c0_15 = arith.constant 0 : index
      %c0_16 = arith.constant 0 : index
      %15 = vector.load %arg4[%c0_15, %c0_16] : memref<1x128xf32, #tpu.memory_space<vmem>>, vector<1x128xf32>
      %16 = vector.broadcast %15 : vector<1x128xf32> to vector<8x128xf32>
      %17 = arith.addf %14, %16 : vector<8x128xf32>
      %c0_17 = arith.constant 0 : index
      %c0_18 = arith.constant 0 : index
      %18 = vector.load %arg5[%c0_17, %c0_18] : memref<8x128xf32, #tpu.memory_space<vmem>>, vector<8x128xf32>
      tpu.vector_store %arg5[%c0_17, %c0_18], %17 {strides = array<i32>} : memref<8x128xf32, #tpu.memory_space<vmem>>, vector<8x128xf32>,
    } else {
    }
    return
  }
  func.func @transform_0(%arg0: i32) -> (i32, i32) {
    %c0_i32 = arith.constant 0 : i32
    %c0_i32_0 = arith.constant 0 : i32
    return %c0_i32, %arg0 : i32, i32
  }
  func.func @transform_1(%arg0: i32) -> (i32, i32) {
    %c0_i32 = arith.constant 0 : i32
    %c0_i32_0 = arith.constant 0 : i32
    return %arg0, %c0_i32 : i32, i32
  }
  func.func @transform_2(%arg0: i32) -> (i32, i32) {
    %c0_i32 = arith.constant 0 : i32
    %c0_i32_0 = arith.constant 0 : i32
    %c0_i32_1 = arith.constant 0 : i32
    return %c0_i32, %c0_i32_0 : i32, i32
  }
  func.func @transform_3(%arg0: i32) -> (i32, i32) {
    %c0_i32 = arith.constant 0 : i32
    %c0_i32_0 = arith.constant 0 : i32
    %c0_i32_1 = arith.constant 0 : i32
    return %c0_i32, %c0_i32_0 : i32, i32
  }
  func.func @transform_4(%arg0: i32) -> (i32, i32) {
    %c0_i32 = arith.constant 0 : i32
    %c0_i32_0 = arith.constant 0 : i32
    %c0_i32_1 = arith.constant 0 : i32
    return %c0_i32, %c0_i32_0 : i32, i32
  }
}

</mosaic_0001>

<bundles_post_ra>
// kernel: tpu_custom_call.1
= control target key start
LH: loop header
LB: loop body
LE: loop exit
PB: predicated region body
PF: predicated region fallthrough
CT: control target
= control target key end

     0   :  { %9 = vsyncpa [#allocation4], 0  ;;  %s585_s0 = inlined_call_operand.hbm [shape: f32[8,1024], index: 0, kind: input, shape index: {}]   ;;  %s586_s1 = inlined_call_operand.hbm [shape: f32[1024,128], index: 1, kind: input, shape index: {}]   ;;  %s587_s2 = inlined_call_operand.hbm [shape: f32[128,128], index: 2, kind: input, shape index: {}]   ;;  %s588_s3 = inlined_call_operand.vmem [shape: f32[1,128], index: 3, kind: input, shape index: {}]   ;;  %s589_s4 = inlined_call_operand.hbm [shape: f32[8,128], index: 4, kind: output, shape index: {}]  }
   0x1   :  { %10 = vsyncpa [#allocation7], 0  ;;  %s27_s17 = sshll.u32 %s586_s1, 4  ;;  %s28_s17 = int_to_ptr.hbm [resolvable:$true] %s27_s17 }
   0x2   :  { %11 = vsyncpa [#allocation5], 0  ;;  %s539_s18 = smov [#allocation6]   ;;  %s17_s22 = sshll.u32 %s585_s0, 4  ;;  %s18_s22 = int_to_ptr.hbm [resolvable:$true] %s17_s22 }
   0x3   :  { %s29_s19 = sshll.u32 %s539_s18, 4  ;;  %s540_s23 = smov 128   ;;  %s30_s19 = int_to_ptr.vmem [resolvable:$true] %s29_s19 }
   0x4   :  { %s541_s24 = smov 8   ;;  %s542_s25 = smov [#allocation3]  }
   0x5   :  { %35 = dma.hbm_to_vmem [thread:$0]  %s28_s17, 16384, %s30_s19, [#allocation7], %s540_s23, %s540_s23, %s541_s24  }
   0x6   :  { %s19_s26 = sshll.u32 %s542_s25, 4  ;;  %s40_s29 = sshll.u32 %s587_s2, 4  ;;  %s20_s26 = int_to_ptr.vmem [resolvable:$true] %s19_s26  ;;  %s41_s29 = int_to_ptr.hbm [resolvable:$true] %s40_s29 }
   0x7   :  { %22 = dma.hbm_to_vmem [thread:$0]  %s18_s22, 1024, %s20_s26, [#allocation4]  }
   0x8   :  { %s543_s1 = smov [#allocation8]  }
   0x9   :  { %s42_s30 = sshll.u32 %s543_s1, 4  ;;  %s43_s30 = int_to_ptr.vmem [resolvable:$true] %s42_s30 }
   0xa   :  { %48 = dma.hbm_to_vmem [thread:$0]  %s41_s29, 2048, %s43_s30, [#allocation7], %s540_s23, %s540_s23, %s541_s24  }
   0xb   :  { %533 = dma.done.wait [#allocation4], 1024  }
   0xc   :  { %534 = vsyncadd [#allocation4], 4294966272 }
   0xd   :  { %535 = dma.done.wait [#allocation7], 18432  }
   0xe   :  { %536 = vsyncadd [#allocation7], 4294948864  ;;  %v92_v0 = vld [vmem:[#allocation6 + $0x78] sm:$0xff]  ;;  %v91_v2 = vld [vmem:[#allocation6 + $0x70] sm:$0xff]  ;;  %s544_s5 = smov [#allocation9]   ;;  %s419_s9 = sshll.u32 %s589_s4, 4  ;;  %s420_s9 = int_to_ptr.hbm [resolvable:$true] %s419_s9 }
   0xf   :  { %v124_v1 = vld [vmem:[#allocation6 + $0x178] sm:$0xff]  ;;  %205 = vmatpush.msra.mxu0 %v92_v0  ;;  %v123_v4 = vld [vmem:[#allocation6 + $0x170] sm:$0xff]  ;;  %v90_v6 = vld [vmem:[#allocation6 + $0x68] sm:$0xff]  ;;  %s417_s6 = sshll.u32 %s544_s5, 4  ;;  %s418_s6 = int_to_ptr.vmem [resolvable:$true] %s417_s6 }
  0x10   :  { %245 = vmatpush.msra.mxu2 %v124_v1  ;;  %v108_v3 = vld [vmem:[#allocation6 + $0xf8] sm:$0xff]  ;;  %v107_v7 = vld [vmem:[#allocation6 + $0xf0] sm:$0xff]  ;;  %v122_v8 = vld [vmem:[#allocation6 + $0x168] sm:$0xff] }
  0x11   :  { %v140_v5 = vld [vmem:[#allocation6 + $0x1f8] sm:$0xff]  ;;  %225 = vmatpush.msra.mxu1 %v108_v3  ;;  %206 = vmatpush.msra.mxu0 %v91_v2  ;;  %v139_v9 = vld [vmem:[#allocation6 + $0x1f0] sm:$0xff]  ;;  %v106_v10 = vld [vmem:[#allocation6 + $0xe8] sm:$0xff] }
  0x12   :  { %265 = vmatpush.msra.mxu3 %v140_v5  ;;  %246 = vmatpush.msra.mxu2 %v123_v4  ;;  %v89_v11 = vld [vmem:[#allocation6 + $0x60] sm:$0xff]  ;;  %v138_v13 = vld [vmem:[#allocation6 + $0x1e8] sm:$0xff]  ;;  %v88_v16 = vld [vmem:[#allocation6 + $0x58] sm:$0xff] }
  0x13   :  { %226 = vmatpush.msra.mxu1 %v107_v7  ;;  %v121_v12 = vld [vmem:[#allocation6 + $0x160] sm:$0xff]  ;;  %207 = vmatpush.msra.mxu0 %v90_v6  ;;  %v120_v17 = vld [vmem:[#allocation6 + $0x158] sm:$0xff]  ;;  %v87_v20 = vld [vmem:[#allocation6 + $0x50] sm:$0xff] }
  0x14   :  { %266 = vmatpush.msra.mxu3 %v139_v9  ;;  %247 = vmatpush.msra.mxu2 %v122_v8  ;;  %v105_v14 = vld [vmem:[#allocation6 + $0xe0] sm:$0xff]  ;;  %v104_v18 = vld [vmem:[#allocation6 + $0xd8] sm:$0xff]  ;;  %v119_v21 = vld [vmem:[#allocation6 + $0x150] sm:$0xff] }
  0x15   :  { %v137_v15 = vld [vmem:[#allocation6 + $0x1e0] sm:$0xff]  ;;  %227 = vmatpush.msra.mxu1 %v106_v10  ;;  %208 = vmatpush.msra.mxu0 %v89_v11  ;;  %v136_v19 = vld [vmem:[#allocation6 + $0x1d8] sm:$0xff]  ;;  %v103_v22 = vld [vmem:[#allocation6 + $0xd0] sm:$0xff] }
  0x16   :  { %267 = vmatpush.msra.mxu3 %v138_v13  ;;  %248 = vmatpush.msra.mxu2 %v121_v12  ;;  %v135_v23 = vld [vmem:[#allocation6 + $0x1d0] sm:$0xff]  ;;  %v86_v24 = vld [vmem:[#allocation6 + $0x48] sm:$0xff]  ;;  %v85_v28 = vld [vmem:[#allocation6 + $0x40] sm:$0xff] }
  0x17   :  { %228 = vmatpush.msra.mxu1 %v105_v14  ;;  %209 = vmatpush.msra.mxu0 %v88_v16  ;;  %v118_v25 = vld [vmem:[#allocation6 + $0x148] sm:$0xff]  ;;  %v117_v29 = vld [vmem:[#allocation6 + $0x140] sm:$0xff]  ;;  %v84_v32 = vld [vmem:[#allocation6 + $0x38] sm:$0xff] }
  0x18   :  { %268 = vmatpush.msra.mxu3 %v137_v15  ;;  %249 = vmatpush.msra.mxu2 %v120_v17  ;;  %v102_v26 = vld [vmem:[#allocation6 + $0xc8] sm:$0xff]  ;;  %v101_v30 = vld [vmem:[#allocation6 + $0xc0] sm:$0xff]  ;;  %v116_v33 = vld [vmem:[#allocation6 + $0x138] sm:$0xff] }
  0x19   :  { %229 = vmatpush.msra.mxu1 %v104_v18  ;;  %210 = vmatpush.msra.mxu0 %v87_v20  ;;  %v134_v27 = vld [vmem:[#allocation6 + $0x1c8] sm:$0xff]  ;;  %v133_v31 = vld [vmem:[#allocation6 + $0x1c0] sm:$0xff]  ;;  %v100_v34 = vld [vmem:[#allocation6 + $0xb8] sm:$0xff] }
  0x1a   :  { %269 = vmatpush.msra.mxu3 %v136_v19  ;;  %250 = vmatpush.msra.mxu2 %v119_v21  ;;  %v132_v35 = vld [vmem:[#allocation6 + $0x1b8] sm:$0xff]  ;;  %v83_v36 = vld [vmem:[#allocation6 + $0x30] sm:$0xff]  ;;  %v82_v40 = vld [vmem:[#allocation6 + $0x28] sm:$0xff] }
  0x1b   :  { %230 = vmatpush.msra.mxu1 %v103_v22  ;;  %211 = vmatpush.msra.mxu0 %v86_v24  ;;  %v115_v37 = vld [vmem:[#allocation6 + $0x130] sm:$0xff]  ;;  %v114_v41 = vld [vmem:[#allocation6 + $0x128] sm:$0xff]  ;;  %v81_v44 = vld [vmem:[#allocation6 + $0x20] sm:$0xff] }
  0x1c   :  { %270 = vmatpush.msra.mxu3 %v135_v23  ;;  %251 = vmatpush.msra.mxu2 %v118_v25  ;;  %v99_v38 = vld [vmem:[#allocation6 + $0xb0] sm:$0xff]  ;;  %v98_v42 = vld [vmem:[#allocation6 + $0xa8] sm:$0xff]  ;;  %v113_v45 = vld [vmem:[#allocation6 + $0x120] sm:$0xff] }
  0x1d   :  { %231 = vmatpush.msra.mxu1 %v102_v26  ;;  %212 = vmatpush.msra.mxu0 %v85_v28  ;;  %v131_v39 = vld [vmem:[#allocation6 + $0x1b0] sm:$0xff]  ;;  %v130_v43 = vld [vmem:[#allocation6 + $0x1a8] sm:$0xff]  ;;  %v97_v46 = vld [vmem:[#allocation6 + $0xa0] sm:$0xff] }
  0x1e   :  { %271 = vmatpush.msra.mxu3 %v134_v27  ;;  %252 = vmatpush.msra.mxu2 %v117_v29  ;;  %v129_v47 = vld [vmem:[#allocation6 + $0x1a0] sm:$0xff]  ;;  %v80_v48 = vld [vmem:[#allocation6 + $0x18] sm:$0xff]  ;;  %v79_v52 = vld [vmem:[#allocation6 + $0x10] sm:$0xff] }
  0x1f   :  { %232 = vmatpush.msra.mxu1 %v101_v30  ;;  %213 = vmatpush.msra.mxu0 %v84_v32  ;;  %v112_v49 = vld [vmem:[#allocation6 + $0x118] sm:$0xff]  ;;  %v111_v53 = vld [vmem:[#allocation6 + $0x110] sm:$0xff]  ;;  %v78_v56 = vld [vmem:[#allocation6 + $0x8] sm:$0xff] }
  0x20   :  { %272 = vmatpush.msra.mxu3 %v133_v31  ;;  %253 = vmatpush.msra.mxu2 %v116_v33  ;;  %v96_v50 = vld [vmem:[#allocation6 + $0x98] sm:$0xff]  ;;  %v95_v54 = vld [vmem:[#allocation6 + $0x90] sm:$0xff]  ;;  %v110_v57 = vld [vmem:[#allocation6 + $0x108] sm:$0xff] }
  0x21   :  { %233 = vmatpush.msra.mxu1 %v100_v34  ;;  %214 = vmatpush.msra.mxu0 %v83_v36  ;;  %v128_v51 = vld [vmem:[#allocation6 + $0x198] sm:$0xff]  ;;  %v127_v55 = vld [vmem:[#allocation6 + $0x190] sm:$0xff]  ;;  %v94_v58 = vld [vmem:[#allocation6 + $0x88] sm:$0xff] }
  0x22   :  { %273 = vmatpush.msra.mxu3 %v132_v35  ;;  %254 = vmatpush.msra.mxu2 %v115_v37  ;;  %v126_v59 = vld [vmem:[#allocation6 + $0x188] sm:$0xff]  ;;  %v77_v60 = vld [vmem:[#allocation6] sm:$0xff]  ;;  %v156_v62 = vld [vmem:[#allocation6 + $0x278] sm:$0xff] }
  0x23   :  { %234 = vmatpush.msra.mxu1 %v99_v38  ;;  %215 = vmatpush.msra.mxu0 %v82_v40  ;;  %v109_v61 = vld [vmem:[#allocation6 + $0x100] sm:$0xff]  ;;  %v188_v63 = vld [vmem:[#allocation6 + $0x378] sm:$0xff]  ;;  %v155_v2 = vld [vmem:[#allocation6 + $0x270] sm:$0xff] }
  0x24   :  { %274 = vmatpush.msra.mxu3 %v131_v39  ;;  %255 = vmatpush.msra.mxu2 %v114_v41  ;;  %v93_v0 = vld [vmem:[#allocation6 + $0x80] sm:$0xff]  ;;  %v172_v3 = vld [vmem:[#allocation6 + $0x2f8] sm:$0xff]  ;;  %v187_v4 = vld [vmem:[#allocation6 + $0x370] sm:$0xff] }
  0x25   :  { %235 = vmatpush.msra.mxu1 %v98_v42  ;;  %216 = vmatpush.msra.mxu0 %v81_v44  ;;  %v125_v1 = vld [vmem:[#allocation6 + $0x180] sm:$0xff]  ;;  %v204_v5 = vld [vmem:[#allocation6 + $0x3f8] sm:$0xff]  ;;  %v154_v6 = vld [vmem:[#allocation6 + $0x268] sm:$0xff] }
  0x26   :  { %275 = vmatpush.msra.mxu3 %v130_v43  ;;  %256 = vmatpush.msra.mxu2 %v113_v45  ;;  %v171_v7 = vld [vmem:[#allocation6 + $0x2f0] sm:$0xff]  ;;  %v186_v8 = vld [vmem:[#allocation6 + $0x368] sm:$0xff]  ;;  %v153_v10 = vld [vmem:[#allocation6 + $0x260] sm:$0xff] }
  0x27   :  { %236 = vmatpush.msra.mxu1 %v97_v46  ;;  %217 = vmatpush.msra.mxu0 %v80_v48  ;;  %v203_v9 = vld [vmem:[#allocation6 + $0x3f0] sm:$0xff]  ;;  %v170_v11 = vld [vmem:[#allocation6 + $0x2e8] sm:$0xff]  ;;  %v185_v12 = vld [vmem:[#allocation6 + $0x360] sm:$0xff] }
  0x28   :  { %276 = vmatpush.msra.mxu3 %v129_v47  ;;  %257 = vmatpush.msra.mxu2 %v112_v49  ;;  %v202_v13 = vld [vmem:[#allocation6 + $0x3e8] sm:$0xff]  ;;  %v152_v14 = vld [vmem:[#allocation6 + $0x258] sm:$0xff]  ;;  %v169_v15 = vld [vmem:[#allocation6 + $0x2e0] sm:$0xff] }
  0x29   :  { %237 = vmatpush.msra.mxu1 %v96_v50  ;;  %218 = vmatpush.msra.mxu0 %v79_v52  ;;  %v184_v16 = vld [vmem:[#allocation6 + $0x358] sm:$0xff]  ;;  %v201_v17 = vld [vmem:[#allocation6 + $0x3e0] sm:$0xff]  ;;  %v151_v18 = vld [vmem:[#allocation6 + $0x250] sm:$0xff] }
  0x2a   :  { %277 = vmatpush.msra.mxu3 %v128_v51  ;;  %258 = vmatpush.msra.mxu2 %v111_v53  ;;  %v168_v19 = vld [vmem:[#allocation6 + $0x2d8] sm:$0xff]  ;;  %v183_v20 = vld [vmem:[#allocation6 + $0x350] sm:$0xff]  ;;  %v150_v22 = vld [vmem:[#allocation6 + $0x248] sm:$0xff] }
  0x2b   :  { %238 = vmatpush.msra.mxu1 %v95_v54  ;;  %219 = vmatpush.msra.mxu0 %v78_v56  ;;  %v200_v21 = vld [vmem:[#allocation6 + $0x3d8] sm:$0xff]  ;;  %v167_v23 = vld [vmem:[#allocation6 + $0x2d0] sm:$0xff]  ;;  %v182_v24 = vld [vmem:[#allocation6 + $0x348] sm:$0xff] }
  0x2c   :  { %278 = vmatpush.msra.mxu3 %v127_v55  ;;  %259 = vmatpush.msra.mxu2 %v110_v57  ;;  %v199_v25 = vld [vmem:[#allocation6 + $0x3d0] sm:$0xff]  ;;  %v149_v26 = vld [vmem:[#allocation6 + $0x240] sm:$0xff]  ;;  %v166_v27 = vld [vmem:[#allocation6 + $0x2c8] sm:$0xff] }
  0x2d   :  { %239 = vmatpush.msra.mxu1 %v94_v58  ;;  %220 = vmatpush.msra.mxu0 %v77_v60  ;;  %v181_v28 = vld [vmem:[#allocation6 + $0x340] sm:$0xff]  ;;  %v198_v29 = vld [vmem:[#allocation6 + $0x3c8] sm:$0xff]  ;;  %v148_v30 = vld [vmem:[#allocation6 + $0x238] sm:$0xff] }
  0x2e   :  { %279 = vmatpush.msra.mxu3 %v126_v59  ;;  %260 = vmatpush.msra.mxu2 %v109_v61  ;;  %v165_v31 = vld [vmem:[#allocation6 + $0x2c0] sm:$0xff]  ;;  %v180_v32 = vld [vmem:[#allocation6 + $0x338] sm:$0xff]  ;;  %v147_v34 = vld [vmem:[#allocation6 + $0x230] sm:$0xff] }
  0x2f   :  { %285 = vmatpush.msrb.mxu0 %v156_v62  ;;  %240 = vmatpush.msra.mxu1 %v93_v0  ;;  %v197_v33 = vld [vmem:[#allocation6 + $0x3c0] sm:$0xff]  ;;  %v164_v35 = vld [vmem:[#allocation6 + $0x2b8] sm:$0xff]  ;;  %v179_v36 = vld [vmem:[#allocation6 + $0x330] sm:$0xff] }
  0x30   :  { %325 = vmatpush.msrb.mxu2 %v188_v63  ;;  %280 = vmatpush.msra.mxu3 %v125_v1  ;;  %v196_v37 = vld [vmem:[#allocation6 + $0x3b8] sm:$0xff]  ;;  %v146_v38 = vld [vmem:[#allocation6 + $0x228] sm:$0xff]  ;;  %v163_v39 = vld [vmem:[#allocation6 + $0x2b0] sm:$0xff] }
  0x31   :  { %286 = vmatpush.msrb.mxu0 %v155_v2  ;;  %305 = vmatpush.msrb.mxu1 %v172_v3  ;;  %v178_v40 = vld [vmem:[#allocation6 + $0x328] sm:$0xff]  ;;  %v195_v41 = vld [vmem:[#allocation6 + $0x3b0] sm:$0xff]  ;;  %v145_v43 = vld [vmem:[#allocation6 + $0x220] sm:$0xff] }
  0x32   :  { %326 = vmatpush.msrb.mxu2 %v187_v4  ;;  %345 = vmatpush.msrb.mxu3 %v204_v5  ;;  %v71_v42 = vld [vmem:[#allocation3 + $0x10] sm:$0xff]  ;;  %v162_v44 = vld [vmem:[#allocation6 + $0x2a8] sm:$0xff]  ;;  %v177_v45 = vld [vmem:[#allocation6 + $0x320] sm:$0xff] }
  0x33   :  { %287 = vmatpush.msrb.mxu0 %v154_v6  ;;  %306 = vmatpush.msrb.mxu1 %v171_v7  ;;  %v194_v46 = vld [vmem:[#allocation6 + $0x3a8] sm:$0xff]  ;;  %v69_v47 = vld [vmem:[#allocation3] sm:$0xff]  ;;  %v72_v48 = vld [vmem:[#allocation3 + $0x18] sm:$0xff] }
  0x34   :  { %327 = vmatpush.msrb.mxu2 %v186_v8  ;;  %346 = vmatpush.msrb.mxu3 %v203_v9  ;;  %v144_v49 = vld [vmem:[#allocation6 + $0x218] sm:$0xff]  ;;  %v161_v50 = vld [vmem:[#allocation6 + $0x2a0] sm:$0xff]  ;;  %v70_v53 = vld [vmem:[#allocation3 + $0x8] sm:$0xff] }
  0x35   :  { %288 = vmatpush.msrb.mxu0 %v153_v10  ;;  %307 = vmatpush.msrb.mxu1 %v170_v11  ;;  %v176_v51 = vld [vmem:[#allocation6 + $0x318] sm:$0xff]  ;;  %v193_v52 = vld [vmem:[#allocation6 + $0x3a0] sm:$0xff]  ;;  %v143_v54 = vld [vmem:[#allocation6 + $0x210] sm:$0xff] }
  0x36   :  { %328 = vmatpush.msrb.mxu2 %v185_v12  ;;  %347 = vmatpush.msrb.mxu3 %v202_v13  ;;  %v160_v55 = vld [vmem:[#allocation6 + $0x298] sm:$0xff]  ;;  %v175_v56 = vld [vmem:[#allocation6 + $0x310] sm:$0xff]  ;;  %v142_v58 = vld [vmem:[#allocation6 + $0x208] sm:$0xff] }
  0x37   :  { %289 = vmatpush.msrb.mxu0 %v152_v14  ;;  %308 = vmatpush.msrb.mxu1 %v169_v15  ;;  %v192_v57 = vld [vmem:[#allocation6 + $0x398] sm:$0xff]  ;;  %v159_v59 = vld [vmem:[#allocation6 + $0x290] sm:$0xff]  ;;  %v174_v60 = vld [vmem:[#allocation6 + $0x308] sm:$0xff] }
  0x38   :  { %329 = vmatpush.msrb.mxu2 %v184_v16  ;;  %348 = vmatpush.msrb.mxu3 %v201_v17  ;;  %v191_v61 = vld [vmem:[#allocation6 + $0x390] sm:$0xff]  ;;  %v141_v62 = vld [vmem:[#allocation6 + $0x200] sm:$0xff]  ;;  %v158_v63 = vld [vmem:[#allocation6 + $0x288] sm:$0xff] }
  0x39   :  { %290 = vmatpush.msrb.mxu0 %v151_v18  ;;  %309 = vmatpush.msrb.mxu1 %v168_v19  ;;  %v173_v0 = vld [vmem:[#allocation6 + $0x300] sm:$0xff]  ;;  %v190_v1 = vld [vmem:[#allocation6 + $0x388] sm:$0xff]  ;;  %v75_v3 = vld [vmem:[#allocation3 + $0x30] sm:$0xff] }
  0x3a   :  { %330 = vmatpush.msrb.mxu2 %v183_v20  ;;  %349 = vmatpush.msrb.mxu3 %v200_v21  ;;  %v73_v2 = vld [vmem:[#allocation3 + $0x20] sm:$0xff]  ;;  %v74_v6 = vld [vmem:[#allocation3 + $0x28] sm:$0xff]  ;;  %v76_v7 = vld [vmem:[#allocation3 + $0x38] sm:$0xff] }
  0x3b   :  { %291 = vmatpush.msrb.mxu0 %v150_v22  ;;  %310 = vmatpush.msrb.mxu1 %v167_v23  ;;  %v157_v4 = vld [vmem:[#allocation6 + $0x280] sm:$0xff]  ;;  %v386_v8 = vld [vmem:[#allocation8 + $0x78] sm:$0xff]  ;;  %v385_v9 = vld [vmem:[#allocation8 + $0x70] sm:$0xff] }
  0x3c   :  { %331 = vmatpush.msrb.mxu2 %v182_v24  ;;  %350 = vmatpush.msrb.mxu3 %v199_v25  ;;  %v189_v5 = vld [vmem:[#allocation6 + $0x380] sm:$0xff]  ;;  %v384_v10 = vld [vmem:[#allocation8 + $0x68] sm:$0xff]  ;;  %v382_v12 = vld [vmem:[#allocation8 + $0x58] sm:$0xff] }
  0x3d   :  { %292 = vmatpush.msrb.mxu0 %v149_v26  ;;  %311 = vmatpush.msrb.mxu1 %v166_v27  ;;  %v383_v11 = vld [vmem:[#allocation8 + $0x60] sm:$0xff]  ;;  %v381_v13 = vld [vmem:[#allocation8 + $0x50] sm:$0xff]  ;;  %v380_v14 = vld [vmem:[#allocation8 + $0x48] sm:$0xff] }
  0x3e   :  { %332 = vmatpush.msrb.mxu2 %v181_v28  ;;  %351 = vmatpush.msrb.mxu3 %v198_v29  ;;  %v379_v15 = vld [vmem:[#allocation8 + $0x40] sm:$0xff]  ;;  %v378_v16 = vld [vmem:[#allocation8 + $0x38] sm:$0xff]  ;;  %v377_v17 = vld [vmem:[#allocation8 + $0x30] sm:$0xff] }
  0x3f   :  { %293 = vmatpush.msrb.mxu0 %v148_v30  ;;  %312 = vmatpush.msrb.mxu1 %v165_v31  ;;  %v376_v18 = vld [vmem:[#allocation8 + $0x28] sm:$0xff]  ;;  %v375_v19 = vld [vmem:[#allocation8 + $0x20] sm:$0xff]  ;;  %v374_v20 = vld [vmem:[#allocation8 + $0x18] sm:$0xff] }
  0x40   :  { %333 = vmatpush.msrb.mxu2 %v180_v32  ;;  %352 = vmatpush.msrb.mxu3 %v197_v33  ;;  %v373_v21 = vld [vmem:[#allocation8 + $0x10] sm:$0xff]  ;;  %v372_v22 = vld [vmem:[#allocation8 + $0x8] sm:$0xff]  ;;  %v371_v23 = vld [vmem:[#allocation8] sm:$0xff] }
  0x41   :  { %294 = vmatpush.msrb.mxu0 %v147_v34  ;;  %313 = vmatpush.msrb.mxu1 %v164_v35 }
  0x42   :  { %334 = vmatpush.msrb.mxu2 %v179_v36  ;;  %353 = vmatpush.msrb.mxu3 %v196_v37 }
  0x43   :  { %295 = vmatpush.msrb.mxu0 %v146_v38  ;;  %314 = vmatpush.msrb.mxu1 %v163_v39  ;;  %v436_v39 = vld [vmem:[%s588_s3] ss:$0 sm:$0xff] }
  0x44   :  { %335 = vmatpush.msrb.mxu2 %v178_v40  ;;  %354 = vmatpush.msrb.mxu3 %v195_v41 }
  0x45   :  { %261 = vmatmul.f32.vlgmr.msra.gmra.mxu2 %v71_v42  ;;  %296 = vmatpush.msrb.mxu0 %v145_v43 }
  0x46   :  { %315 = vmatpush.msrb.mxu1 %v162_v44  ;;  %336 = vmatpush.msrb.mxu2 %v177_v45 }
  0x47   :  { %355 = vmatpush.msrb.mxu3 %v194_v46  ;;  %221 = vmatmul.f32.vlgmr.msra.gmra.mxu0 %v69_v47 }
  0x48   :  { %281 = vmatmul.f32.vlgmr.msra.gmra.mxu3 %v72_v48  ;;  %297 = vmatpush.msrb.mxu0 %v144_v49 }
  0x49   :  { %316 = vmatpush.msrb.mxu1 %v161_v50  ;;  %337 = vmatpush.msrb.mxu2 %v176_v51 }
  0x4a   :  { %356 = vmatpush.msrb.mxu3 %v193_v52  ;;  %241 = vmatmul.f32.vlgmr.msra.gmra.mxu1 %v70_v53 }
  0x4b   :  { %298 = vmatpush.msrb.mxu0 %v143_v54  ;;  %317 = vmatpush.msrb.mxu1 %v160_v55 }
  0x4c   :  { %338 = vmatpush.msrb.mxu2 %v175_v56  ;;  %357 = vmatpush.msrb.mxu3 %v192_v57 }
  0x4d   :  { %299 = vmatpush.msrb.mxu0 %v142_v58  ;;  %318 = vmatpush.msrb.mxu1 %v159_v59 }
  0x4e   :  { %339 = vmatpush.msrb.mxu2 %v174_v60  ;;  %358 = vmatpush.msrb.mxu3 %v191_v61 }
  0x4f   :  { %300 = vmatpush.msrb.mxu0 %v141_v62  ;;  %319 = vmatpush.msrb.mxu1 %v158_v63 }
  0x50   :  { %340 = vmatpush.msrb.mxu2 %v173_v0  ;;  %359 = vmatpush.msrb.mxu3 %v190_v1 }
  0x51   :  { %301 = vmatmul.f32.vlgmr.msrb.gmra.mxu0 %v73_v2  ;;  %341 = vmatmul.f32.vlgmr.msrb.gmra.mxu2 %v75_v3 }
  0x52   :  { %320 = vmatpush.msrb.mxu1 %v157_v4  ;;  %360 = vmatpush.msrb.mxu3 %v189_v5 }
  0x53   :  { %321 = vmatmul.f32.vlgmr.msrb.gmra.mxu1 %v74_v6  ;;  %361 = vmatmul.f32.vlgmr.msrb.gmra.mxu3 %v76_v7 }
  0x54   :  { %391 = vmatpush.msra.mxu0 %v386_v8 }
  0x56   :  { %392 = vmatpush.msra.mxu0 %v385_v9 }
  0x58   :  { %393 = vmatpush.msra.mxu0 %v384_v10 }
  0x5a   :  { %394 = vmatpush.msra.mxu0 %v383_v11 }
  0x5c   :  { %395 = vmatpush.msra.mxu0 %v382_v12 }
  0x5e   :  { %396 = vmatpush.msra.mxu0 %v381_v13 }
  0x60   :  { %397 = vmatpush.msra.mxu0 %v380_v14 }
  0x62   :  { %398 = vmatpush.msra.mxu0 %v379_v15 }
  0x64   :  { %399 = vmatpush.msra.mxu0 %v378_v16 }
  0x66   :  { %400 = vmatpush.msra.mxu0 %v377_v17 }
  0x68   :  { %401 = vmatpush.msra.mxu0 %v376_v18 }
  0x6a   :  { %402 = vmatpush.msra.mxu0 %v375_v19 }
  0x6c   :  { %403 = vmatpush.msra.mxu0 %v374_v20 }
  0x6e   :  { %404 = vmatpush.msra.mxu0 %v373_v21 }
  0x70   :  { %405 = vmatpush.msra.mxu0 %v372_v22 }
  0x72   :  { %406 = vmatpush.msra.mxu0 %v371_v23 }
  0xc4   :  { %v222_v24 = vpop.f32.mrf.mxu0 }
  0xc7   :  { %v242_v25 = vpop.f32.mrf.mxu1 }
  0xc8   :  { %v243_v26 = vadd.f32 %v242_v25, %v222_v24  ;;  %v262_v27 = vpop.f32.mrf.mxu2 }
  0xca   :  { %v263_v28 = vadd.f32 %v262_v27, %v243_v26 }
  0xcb   :  { %v282_v29 = vpop.f32.mrf.mxu3 }
  0xcc   :  { %v283_v30 = vadd.f32 %v282_v29, %v263_v28 }
  0xce   :  { %v302_v31 = vpop.f32.mrf.mxu0 }
  0xcf   :  { %v303_v32 = vadd.f32 %v302_v31, %v283_v30 }
  0xd0   :  { %v322_v33 = vpop.f32.mrf.mxu1 }
  0xd1   :  { %v323_v34 = vadd.f32 %v322_v33, %v303_v32 }
  0xd4   :  { %v342_v35 = vpop.f32.mrf.mxu2 }
  0xd5   :  { %v343_v36 = vadd.f32 %v342_v35, %v323_v34 }
  0xd6   :  { %v362_v37 = vpop.f32.mrf.mxu3 }
  0xd7   :  { %v363_v38 = vadd.f32 %v362_v37, %v343_v36 }
  0xd9   :  { %407 = vmatmul.f32.vlgmr.msra.gmra.mxu0 %v363_v38 }
 0x156   :  { %v408_v40 = vpop.f32.mrf.mxu0 }
 0x157   :  { %v409_v41 = vadd.f32 %v436_v39, %v408_v40 }
 0x159   :  { %411 = vst [vmem:[#allocation9] sm:$0xff] %v409_v41 }
 0x15a   :  { %422 = dma.vmem_to_hbm [thread:$0]  %s418_s6, 128, %s420_s9, [#allocation5]  }
 0x15b   :  { %537 = dma.done.wait [#allocation5], 128  }
 0x15c   :  { %538 = vsyncadd [#allocation5], 4294967168 }
 0x15d   :  { %427 = vsyncpa [#allocation4], 1 }
 0x15e   :  { %428 = vsyncpa [#allocation7], 1 }
 0x15f   :  { %429 = vsyncpa [#allocation5], 1 }

</bundles_post_ra>
